<compile_context>
chip_gen: v5e
topology: v5e:2x2
jax: 0.10.0
libtpu: 0.0.40
codegen_flags: <defaults>
</compile_context>

<pallas_src>
import functools

import jax
import jax.numpy as jnp
from jax.experimental import pallas as pl
from jax.experimental.pallas import tpu as pltpu

_LANES = 128
_SUBLANES = 8


def _round_up(x, m):
    return ((x + m - 1) // m) * m


def _agree_loss_kernel(pos_ref, neg_ref, out_ref, acc_ref, *,
                       total_elems, tile_rows, steps_per_part):
    p = pl.program_id(0)          # partition (megacore-parallel axis)
    j = pl.program_id(1)          # serial reduction step within the partition

    @pl.when(j == 0)
    def _():
        acc_ref[...] = jnp.zeros_like(acc_ref)

    # Row-level boundary test (avoids int32 overflow of row*128 + lane for very
    # large n).  This tile covers flat rows [row0, row0 + tile_rows).
    full_rows = total_elems // _LANES          # rows that are entirely valid
    rem = total_elems - full_rows * _LANES     # valid lanes in row `full_rows`
    row0 = (p * steps_per_part + j) * tile_rows
    needs_mask = (row0 + tile_rows) > full_rows

    def _accum(masked):
        def body():
            d = (pos_ref[...].astype(jnp.float32)
                 - neg_ref[...].astype(jnp.float32) - 1.0)
            if masked:
                row_ids = jax.lax.broadcasted_iota(
                    jnp.int32, (tile_rows, _LANES), 0) + row0
                lane_ids = jax.lax.broadcasted_iota(
                    jnp.int32, (tile_rows, _LANES), 1)
                valid = (row_ids < full_rows) | (
                    (row_ids == full_rows) & (lane_ids < rem))
                d = jnp.where(valid, d, 0.0)
            sq = d * d
            # Reduce only the leading axis into the (8, 128) accumulator:
            # sublane-aligned VPU adds; the single cross-lane (XLU) reduction
            # happens once per partition at the very end.
            acc_ref[...] += jnp.sum(sq.reshape(-1, _SUBLANES, _LANES), axis=0)
        return body

    # Interior tiles (the vast majority for large inputs) skip all mask work.
    pl.when(jnp.logical_not(needs_mask))(_accum(False))
    # Boundary tiles (lane-pad tail, Pallas partial last block, clamped
    # duplicate blocks of the parallel split) zero out invalid slots.
    pl.when(needs_mask)(_accum(True))

    @pl.when(j == pl.num_programs(1) - 1)
    def _():
        out_ref[0, 0] = jnp.sum(acc_ref[...])


def _run_reduction(pos2d, neg2d, total_elems, tile_rows, num_parallel, itemsize):
    rows = pos2d.shape[0]
    num_row_blocks = pl.cdiv(rows, tile_rows)
    num_parallel = max(1, min(int(num_parallel), num_row_blocks))
    steps_per_part = pl.cdiv(num_row_blocks, num_parallel)

    def in_index_map(p, j):
        # Clamp so the auto-pipelined DMA never targets a fully out-of-bounds
        # block; duplicated blocks are zeroed by the in-kernel boundary mask.
        return (jnp.minimum(p * steps_per_part + j, num_row_blocks - 1), 0)

    kernel = functools.partial(
        _agree_loss_kernel,
        total_elems=total_elems,
        tile_rows=tile_rows,
        steps_per_part=steps_per_part,
    )

    partials = pl.pallas_call(
        kernel,
        out_shape=jax.ShapeDtypeStruct((num_parallel, 1), jnp.float32),
        grid_spec=pltpu.PrefetchScalarGridSpec(
            num_scalar_prefetch=0,
            grid=(num_parallel, steps_per_part),
            in_specs=[
                pl.BlockSpec((tile_rows, _LANES), in_index_map),
                pl.BlockSpec((tile_rows, _LANES), in_index_map),
            ],
            out_specs=pl.BlockSpec(
                (1, 1), lambda p, j: (p, 0), memory_space=pltpu.SMEM
            ),
            scratch_shapes=[pltpu.VMEM((_SUBLANES, _LANES), jnp.float32)],
        ),
        compiler_params=pltpu.CompilerParams(
            # TODO(synk): verify on v7x (xprof) that "parallel" really shards
            # axis 0 across both TensorCores; if not, switch to CORE_PARALLEL.
            dimension_semantics=("parallel", "arbitrary"),
            # 2 inputs x 2 pipeline buffers x ~4 MiB blocks = ~16 MiB; raise the
            # scoped-VMEM cap (v5e default is 16 MiB) with headroom.  Fits every
            # generation's physical VMEM (>= 64 MiB).
            vmem_limit_bytes=40 * 1024 * 1024,
        ),
        cost_estimate=pl.CostEstimate(
            flops=3 * total_elems,
            transcendentals=0,
            bytes_accessed=2 * rows * _LANES * itemsize,
        ),
    )(pos2d, neg2d)
    return jnp.sum(partials)


def agree_loss(pos_preds, neg_preds, *, tile_rows=None, num_parallel=2):
    """Computes mean((pos - neg - 1)^2) with a tiled Pallas TPU reduction."""
    assert pos_preds.shape == neg_preds.shape
    n = int(pos_preds.size)
    itemsize = jnp.dtype(pos_preds.dtype).itemsize

    pos_flat = pos_preds.reshape(-1)
    neg_flat = neg_preds.reshape(-1)

    prefix = (n // _LANES) * _LANES
    tail_sum = jnp.float32(0.0)

    if prefix == 0:
        # Tiny input (< 128 elems): pad a single lane row (negligible cost);
        # padded slots are masked inside the kernel.
        pad = _LANES - n
        pos2d = jnp.pad(pos_flat, (0, pad)).reshape(1, _LANES)
        neg2d = jnp.pad(neg_flat, (0, pad)).reshape(1, _LANES)
        kernel_elems = n
    elif prefix < n:
        # Unaligned: run the kernel on the lane-aligned prefix and reduce the
        # <=127-element tail in plain jnp — no full-array pad copy in HBM.
        pos2d = pos_flat[:prefix].reshape(prefix // _LANES, _LANES)
        neg2d = neg_flat[:prefix].reshape(prefix // _LANES, _LANES)
        kernel_elems = prefix
        tail = (pos_flat[prefix:].astype(jnp.float32)
                - neg_flat[prefix:].astype(jnp.float32) - 1.0)
        tail_sum = jnp.sum(tail * tail)
    else:
        # Lane-aligned: pure (free) reshape, no copies at all.
        pos2d = pos_flat.reshape(n // _LANES, _LANES)
        neg2d = neg_flat.reshape(n // _LANES, _LANES)
        kernel_elems = n

    rows = pos2d.shape[0]

    # Tile sizing: target ~4 MiB per input block (8192 rows f32 / 16384 rows
    # bf16) so the fixed ~0.35us per-grid-step overhead is well amortized even
    # at v7x's 3.2 TB/s HBM.  Clamped down for small inputs; kept a multiple of
    # 16 so both f32 (8,128) and bf16 (16,128) packing constraints hold.
    if tile_rows is None:
        target_block_bytes = 4 * 1024 * 1024
        tile_rows = max(16, target_block_bytes // (_LANES * itemsize))
    tile_rows = max(16, min(int(tile_rows), _round_up(rows, 16)))
    tile_rows = _round_up(tile_rows, 16)

    total_sq = _run_reduction(
        pos2d, neg2d, kernel_elems, tile_rows, num_parallel, itemsize) + tail_sum
    return total_sq / jnp.float32(n)


def agree_loss_ref(pos_preds, neg_preds):
    return jnp.mean(jnp.square(pos_preds.astype(jnp.float32)
                               - neg_preds.astype(jnp.float32) - 1.0))


if __name__ == "__main__":
    key = jax.random.PRNGKey(0)
    k1, k2 = jax.random.split(key)

    # Small shapes consistent with the module: batch=2 users, 8 items each.
    pos_preds = jax.random.normal(k1, (2, 8), dtype=jnp.float32)
    neg_preds = jax.random.normal(k2, (2, 8), dtype=jnp.float32)
    loss = agree_loss(pos_preds, neg_preds)
    jax.block_until_ready(loss)
    ref = agree_loss_ref(pos_preds, neg_preds)
    assert jnp.allclose(loss, ref, atol=1e-5, rtol=1e-5), (loss, ref)

    # Lane-aligned, multi-block case exercising both grid axes (parallel split
    # + serial accumulation) via an explicit small tile.
    k3, k4 = jax.random.split(k1)
    big_pos = jax.random.normal(k3, (64, 8192), dtype=jnp.float32)
    big_neg = jax.random.normal(k4, (64, 8192), dtype=jnp.float32)
    big_loss = agree_loss(big_pos, big_neg, tile_rows=512, num_parallel=2)
    jax.block_until_ready(big_loss)
    big_ref = agree_loss_ref(big_pos, big_neg)
    assert jnp.allclose(big_loss, big_ref, atol=1e-4, rtol=1e-4), (big_loss, big_ref)

    # Same data with default (large) tiling — single-block fast path.
    big_loss2 = agree_loss(big_pos, big_neg)
    jax.block_until_ready(big_loss2)
    assert jnp.allclose(big_loss2, big_ref, atol=1e-4, rtol=1e-4), (big_loss2, big_ref)

    # Unaligned case (n % 128 != 0, n > 128): kernel on the prefix + jnp tail.
    k5, k6 = jax.random.split(k3)
    odd_pos = jax.random.normal(k5, (3, 137), dtype=jnp.float32)
    odd_neg = jax.random.normal(k6, (3, 137), dtype=jnp.float32)
    odd_loss = agree_loss(odd_pos, odd_neg)
    jax.block_until_ready(odd_loss)
    odd_ref = agree_loss_ref(odd_pos, odd_neg)
    assert jnp.allclose(odd_loss, odd_ref, atol=1e-5, rtol=1e-5), (odd_loss, odd_ref)

    print("KERNEL_OK")
</pallas_src>

<mosaic_0001>
module attributes {stable_mosaic.version = 11 : i64} {
  func.func @_agree_loss_kernel(%arg0: i32, %arg1: i32, %arg2: memref<16x128xf32, #tpu.memory_space<vmem>>, %arg3: memref<16x128xf32, #tpu.memory_space<vmem>>, %arg4: memref<1x1xf32, #tpu.memory_space<smem>>, %arg5: memref<8x128xf32, #tpu.memory_space<vmem>>) attributes {dimension_semantics = [#tpu.dimension_semantics<parallel>, #tpu.dimension_semantics<arbitrary>], iteration_bounds = array<i64: 1, 1>, scalar_prefetch = 0 : i64, scratch_operands = 1 : i64, tpu.core_type = #tpu.core_type<tc>, window_params = [{transform_indices = @transform_0, window_bounds = array<i64: 16, 128>}, {transform_indices = @transform_1, window_bounds = array<i64: 16, 128>}, {transform_indices = @transform_2, window_bounds = array<i64: 1, 1>}]} {
    %c0_i32 = arith.constant 0 : i32
    %0 = arith.cmpi eq, %arg1, %c0_i32 : i32
    %1 = arith.extui %0 : i1 to i32
    %c0_i32_0 = arith.constant 0 : i32
    %2 = arith.cmpi ne, %1, %c0_i32_0 : i32
    scf.if %2 {
      %cst = arith.constant 0.000000e+00 : f32
      %16 = vector.broadcast %cst : f32 to vector<8x128xf32>
      %c0 = arith.constant 0 : index
      %c0_7 = arith.constant 0 : index
      %17 = vector.load %arg5[%c0, %c0_7] : memref<8x128xf32, #tpu.memory_space<vmem>>, vector<8x128xf32>
      tpu.vector_store %arg5[%c0, %c0_7], %16 {strides = array<i32>} : memref<8x128xf32, #tpu.memory_space<vmem>>, vector<8x128xf32>,
    } else {
    }
    %c1_i32 = arith.constant 1 : i32
    %3 = arith.muli %arg0, %c1_i32 : i32
    %4 = arith.addi %3, %arg1 : i32
    %c16_i32 = arith.constant 16 : i32
    %5 = arith.muli %4, %c16_i32 : i32
    %c16_i32_1 = arith.constant 16 : i32
    %6 = arith.addi %5, %c16_i32_1 : i32
    %c0_i32_2 = arith.constant 0 : i32
    %7 = arith.cmpi sgt, %6, %c0_i32_2 : i32
    %true = arith.constant true
    %8 = arith.xori %7, %true : i1
    %9 = arith.extui %8 : i1 to i32
    %c0_i32_3 = arith.constant 0 : i32
    %10 = arith.cmpi ne, %9, %c0_i32_3 : i32
    scf.if %10 {
      %c0 = arith.constant 0 : index
      %c0_7 = arith.constant 0 : index
      %16 = vector.load %arg2[%c0, %c0_7] : memref<16x128xf32, #tpu.memory_space<vmem>>, vector<16x128xf32>
      %c0_8 = arith.constant 0 : index
      %c0_9 = arith.constant 0 : index
      %17 = vector.load %arg3[%c0_8, %c0_9] : memref<16x128xf32, #tpu.memory_space<vmem>>, vector<16x128xf32>
      %18 = arith.subf %16, %17 : vector<16x128xf32>
      %cst = arith.constant 1.000000e+00 : f32
      %19 = vector.broadcast %cst : f32 to vector<16x128xf32>
      %20 = arith.subf %18, %19 : vector<16x128xf32>
      %21 = arith.mulf %20, %20 : vector<16x128xf32>
      %c0_10 = arith.constant 0 : index
      %c0_11 = arith.constant 0 : index
      %22 = vector.load %arg5[%c0_10, %c0_11] : memref<8x128xf32, #tpu.memory_space<vmem>>, vector<8x128xf32>
      %23 = vector.shape_cast %21 : vector<16x128xf32> to vector<2x8x128xf32>
      %cst_12 = arith.constant dense<0.000000e+00> : vector<8x128xf32>
      %24 = vector.multi_reduction <add>, %23, %cst_12 [0] : vector<2x8x128xf32> to vector<8x128xf32>
      %25 = arith.addf %22, %24 : vector<8x128xf32>
      %c0_13 = arith.constant 0 : index
      %c0_14 = arith.constant 0 : index
      %26 = vector.load %arg5[%c0_13, %c0_14] : memref<8x128xf32, #tpu.memory_space<vmem>>, vector<8x128xf32>
      tpu.vector_store %arg5[%c0_13, %c0_14], %25 {strides = array<i32>} : memref<8x128xf32, #tpu.memory_space<vmem>>, vector<8x128xf32>,
    } else {
    }
    %11 = arith.extui %7 : i1 to i32
    %c0_i32_4 = arith.constant 0 : i32
    %12 = arith.cmpi ne, %11, %c0_i32_4 : i32
    scf.if %12 {
      %c0 = arith.constant 0 : index
      %c0_7 = arith.constant 0 : index
      %16 = vector.load %arg2[%c0, %c0_7] : memref<16x128xf32, #tpu.memory_space<vmem>>, vector<16x128xf32>
      %c0_8 = arith.constant 0 : index
      %c0_9 = arith.constant 0 : index
      %17 = vector.load %arg3[%c0_8, %c0_9] : memref<16x128xf32, #tpu.memory_space<vmem>>, vector<16x128xf32>
      %18 = arith.subf %16, %17 : vector<16x128xf32>
      %cst = arith.constant 1.000000e+00 : f32
      %19 = vector.broadcast %cst : f32 to vector<16x128xf32>
      %20 = arith.subf %18, %19 : vector<16x128xf32>
      %21 = tpu.iota {dimensions = array<i32: 0>} : vector<16x128xi32>
      %22 = vector.broadcast %5 : i32 to vector<16x128xi32>
      %23 = arith.addi %21, %22 : vector<16x128xi32>
      %24 = tpu.iota {dimensions = array<i32: 1>} : vector<16x128xi32>
      %c0_i32_10 = arith.constant 0 : i32
      %25 = vector.broadcast %c0_i32_10 : i32 to vector<16x128xi32>
      %26 = arith.cmpi slt, %23, %25 : vector<16x128xi32>
      %c0_i32_11 = arith.constant 0 : i32
      %27 = vector.broadcast %c0_i32_11 : i32 to vector<16x128xi32>
      %28 = arith.cmpi eq, %23, %27 : vector<16x128xi32>
      %c16_i32_12 = arith.constant 16 : i32
      %29 = vector.broadcast %c16_i32_12 : i32 to vector<16x128xi32>
      %30 = arith.cmpi slt, %24, %29 : vector<16x128xi32>
      %31 = arith.andi %28, %30 : vector<16x128xi1>
      %32 = arith.ori %26, %31 : vector<16x128xi1>
      %cst_13 = arith.constant 0.000000e+00 : f32
      %33 = vector.broadcast %cst_13 : f32 to vector<16x128xf32>
      %34 = arith.select %32, %20, %33 : vector<16x128xi1>, vector<16x128xf32>
      %35 = arith.mulf %34, %34 : vector<16x128xf32>
      %c0_14 = arith.constant 0 : index
      %c0_15 = arith.constant 0 : index
      %36 = vector.load %arg5[%c0_14, %c0_15] : memref<8x128xf32, #tpu.memory_space<vmem>>, vector<8x128xf32>
      %37 = vector.shape_cast %35 : vector<16x128xf32> to vector<2x8x128xf32>
      %cst_16 = arith.constant dense<0.000000e+00> : vector<8x128xf32>
      %38 = vector.multi_reduction <add>, %37, %cst_16 [0] : vector<2x8x128xf32> to vector<8x128xf32>
      %39 = arith.addf %36, %38 : vector<8x128xf32>
      %c0_17 = arith.constant 0 : index
      %c0_18 = arith.constant 0 : index
      %40 = vector.load %arg5[%c0_17, %c0_18] : memref<8x128xf32, #tpu.memory_space<vmem>>, vector<8x128xf32>
      tpu.vector_store %arg5[%c0_17, %c0_18], %39 {strides = array<i32>} : memref<8x128xf32, #tpu.memory_space<vmem>>, vector<8x128xf32>,
    } else {
    }
    %c0_i32_5 = arith.constant 0 : i32
    %13 = arith.cmpi eq, %arg1, %c0_i32_5 : i32
    %14 = arith.extui %13 : i1 to i32
    %c0_i32_6 = arith.constant 0 : i32
    %15 = arith.cmpi ne, %14, %c0_i32_6 : i32
    scf.if %15 {
      %c0 = arith.constant 0 : index
      %c0_7 = arith.constant 0 : index
      %16 = vector.load %arg5[%c0, %c0_7] : memref<8x128xf32, #tpu.memory_space<vmem>>, vector<8x128xf32>
      %17 = vector.shape_cast %16 : vector<8x128xf32> to vector<1x8x128xf32>
      %cst = arith.constant dense<0.000000e+00> : vector<1xf32>
      %18 = vector.multi_reduction <add>, %17, %cst [1, 2] : vector<1x8x128xf32> to vector<1xf32>
      %19 = vector.shape_cast %18 : vector<1xf32> to vector<1x1x1xf32>
      %20 = vector.extract %19[0, 0, 0] : f32 from vector<1x1x1xf32>
      %c0_8 = arith.constant 0 : index
      %c0_9 = arith.constant 0 : index
      %21 = memref.load %arg4[%c0_8, %c0_9] : memref<1x1xf32, #tpu.memory_space<smem>>
      memref.store %20, %arg4[%c0_8, %c0_9] : memref<1x1xf32, #tpu.memory_space<smem>>
    } else {
    }
    return
  }
  func.func @transform_0(%arg0: i32, %arg1: i32) -> (i32, i32) {
    %c1_i32 = arith.constant 1 : i32
    %0 = arith.muli %arg0, %c1_i32 : i32
    %1 = arith.addi %0, %arg1 : i32
    %c0_i32 = arith.constant 0 : i32
    %2 = arith.minsi %1, %c0_i32 : i32
    %c0_i32_0 = arith.constant 0 : i32
    %c0_i32_1 = arith.constant 0 : i32
    return %2, %c0_i32_0 : i32, i32
  }
  func.func @transform_1(%arg0: i32, %arg1: i32) -> (i32, i32) {
    %c1_i32 = arith.constant 1 : i32
    %0 = arith.muli %arg0, %c1_i32 : i32
    %1 = arith.addi %0, %arg1 : i32
    %c0_i32 = arith.constant 0 : i32
    %2 = arith.minsi %1, %c0_i32 : i32
    %c0_i32_0 = arith.constant 0 : i32
    %c0_i32_1 = arith.constant 0 : i32
    return %2, %c0_i32_0 : i32, i32
  }
  func.func @transform_2(%arg0: i32, %arg1: i32) -> (i32, i32) {
    %c0_i32 = arith.constant 0 : i32
    %c0_i32_0 = arith.constant 0 : i32
    return %arg0, %c0_i32 : i32, i32
  }
}

</mosaic_0001>

<bundles_post_ra>
// kernel: tpu_custom_call.1
= control target key start
LH: loop header
LB: loop body
LE: loop exit
PB: predicated region body
PF: predicated region fallthrough
CT: control target
= control target key end

     0   :  { %7 = vsyncpa [#allocation4], 0  ;;  %s275_s0 = inlined_call_operand.hbm [shape: f32[1,128], index: 0, kind: input, shape index: {}]   ;;  %s276_s1 = inlined_call_operand.hbm [shape: f32[1,128], index: 1, kind: input, shape index: {}]   ;;  %s277_s2 = inlined_call_operand.hbm [shape: f32[1,1], index: 2, kind: output, shape index: {}]  }
   0x1   :  { %8 = vsyncpa [#allocation7], 0 }
   0x2   :  { %9 = vsyncpa [#allocation5], 0 }
   0x3   :  { %19 = vsyncadd [#allocation4], 240  ;;  %s22_s11 = sshll.u32 %s275_s0, 4  ;;  %s246_s12 = smov [#allocation3]   ;;  %s23_s11 = int_to_ptr.hbm [resolvable:$true] %s22_s11 }
   0x4   :  { %s24_s13 = sshll.u32 %s246_s12, 4  ;;  %s247_s14 = smov 16   ;;  %s25_s13 = int_to_ptr.vmem [resolvable:$true] %s24_s13 }
   0x5   :  { %s248_s15 = smov 1  }
   0x6   :  { %30 = dma.hbm_to_vmem [thread:$0]  %s23_s11, 16, %s25_s13, [#allocation4], %s247_s14, %s247_s14, %s248_s15  }
   0x7   :  { %40 = vsyncadd [#allocation7], 240  ;;  %s43_s18 = sshll.u32 %s276_s1, 4  ;;  %s249_s19 = smov [#allocation6]   ;;  %s44_s18 = int_to_ptr.hbm [resolvable:$true] %s43_s18 }
   0x8   :  { %s45_s20 = sshll.u32 %s249_s19, 4  ;;  %s46_s20 = int_to_ptr.vmem [resolvable:$true] %s45_s20 }
   0x9   :  { %51 = dma.hbm_to_vmem [thread:$0]  %s44_s18, 16, %s46_s20, [#allocation7], %s247_s14, %s247_s14, %s248_s15  }
   0xa   :  { %240 = dma.done.wait [#allocation4], 256  }
   0xb   :  { %241 = vsyncadd [#allocation4], 4294967040 }
   0xc   :  { %242 = dma.done.wait [#allocation7], 256  }
   0xd   :  { %243 = vsyncadd [#allocation7], 4294967040  ;;  %v108_v0 = vlaneseq  ;;  %v100_v3 = vld [vmem:[#allocation3] sm:$0xff]  ;;  %v102_v4 = vld [vmem:[#allocation6] sm:$0xff]  ;;  %s153_s21 = sshll.u32 %s277_s2, 4  ;;  %s250_s23 = smov [#allocation8]   ;;  %s154_s21 = int_to_ptr.hbm [resolvable:$true] %s153_s21 }
   0xe   :  { %v104_v5 = vsub.f32 %v100_v3, %v102_v4 }
   0xf   :  { %v109_v1 = vshrl.u32 %v108_v0, 7  ;;  %v115_v2 = vand.u32 127, %v108_v0 }
  0x10   :  { %v171_v6 = vadd.f32 -1.0, %v104_v5 }
  0x11   :  { %vm118_vm0 = vcmp.eq.s32.totalorder %v109_v1, 0  ;;  %vm120_vm1 = vcmp.lt.s32.totalorder %v115_v2, 16 }
  0x12   :  { %vm121_vm2 = vmand %vm118_vm0, %vm120_vm1 }
  0x13   :  { %v125_v7 = vsel %vm121_vm2, %v171_v6, 0.0 }
  0x14   :  { %v127_v8 = vmul.f32 %v125_v7, %v125_v7 }
  0x16   :  { %137 = vadd.xlane.f32.xlu0 %v127_v8 }
  0x89   :  { %v138_v9 = vpop.xlane.xlu0 %137 }
  0x8a   :  { %v139_v10 = vrot.slane %v138_v9, 4 }
  0x8c   :  { %v140_v11 = vadd.f32 %v139_v10, %v138_v9 }
  0x8e   :  { %v141_v12 = vrot.slane %v140_v11, 2 }
  0x90   :  { %v142_v13 = vadd.f32 %v141_v12, %v140_v11 }
  0x92   :  { %v143_v14 = vrot.slane %v142_v13, 1 }
  0x94   :  { %v144_v15 = vadd.f32 %v143_v14, %v142_v13 }
  0x96   :  { %173 = vpush %v144_v15 }
  0xc7   :  { %s174_s22 = spop %173 }
  0xc8   :  { %147 = sst [smem:[#allocation8]] %s174_s22 }
  0xc9   :  { %156 = dma.smem_to_hbm %s250_s23, 16, %s154_s21, [#allocation5]  }
  0xca   :  { %244 = dma.done.wait [#allocation5], 16  }
  0xcb   :  { %245 = vsyncadd [#allocation5], 4294967280 }
  0xcc   :  { %161 = sfence }
  0xcd   :  { %162 = vsyncpa [#allocation4], 1 }
  0xce   :  { %163 = vsyncpa [#allocation7], 1 }
  0xcf   :  { %164 = vsyncpa [#allocation5], 1 }

</bundles_post_ra>
